<compile_context>
chip_gen: v5e
topology: v5e:2x2
jax: 0.10.0
libtpu: 0.0.40
codegen_flags: <defaults>
</compile_context>

<pallas_src>
import math

import jax
import jax.numpy as jnp
from jax.experimental import pallas as pl
from jax.experimental.pallas import tpu as pltpu


_LANE = 128
_VMEM_LIMIT_BYTES = 48 << 20  # < v7x 64 MiB physical; >> v5e 16 MiB default scoped


def _copy_kernel(x_ref, o_ref):
    # Identity copy of one sublane-aligned, lane-dense tile.
    o_ref[...] = x_ref[...]


def _sublane_multiple(dtype) -> int:
    # f32 -> 8, bf16 -> 16, int8/fp8 -> 32 (sub-32-bit dtypes pack along sublanes).
    return max(8, 32 // jnp.dtype(dtype).itemsize)


def _default_block_bytes() -> int:
    # v7x-class (<=64 MiB VMEM, ~3.2 TB/s HBM): bigger blocks to amortize the
    # ~0.35 us per-grid-step cost.  v5e/v6e: ~4 MiB already sits at ~86% of the
    # HBM roofline for copy-like kernels; bigger buys nothing.
    try:
        vmem = pltpu.get_tpu_info().vmem_capacity_bytes
        if vmem <= (64 << 20):
            return 8 << 20
    except Exception:
        pass
    return 4 << 20


def _pallas_copy(x2d, block_shape, grid, index_map, total_bytes, donate_input):
    kwargs = {}
    if donate_input:
        # Only alias when the caller genuinely donates x (e.g. jit donate_argnums);
        # otherwise XLA inserts a defensive copy and the op gets slower.
        kwargs["input_output_aliases"] = {0: 0}
    return pl.pallas_call(
        _copy_kernel,
        out_shape=jax.ShapeDtypeStruct(x2d.shape, x2d.dtype),
        grid_spec=pltpu.PrefetchScalarGridSpec(
            num_scalar_prefetch=0,
            grid=grid,
            in_specs=[pl.BlockSpec(block_shape, index_map)],
            out_specs=pl.BlockSpec(block_shape, index_map),
        ),
        compiler_params=pltpu.CompilerParams(
            dimension_semantics=("parallel",) * len(grid),
            vmem_limit_bytes=_VMEM_LIMIT_BYTES,
        ),
        cost_estimate=pl.CostEstimate(
            flops=0, transcendentals=0, bytes_accessed=2 * total_bytes),
        **kwargs,
    )(x2d)


def flatten_pallas(x: jax.Array,
                   target_block_bytes: int | None = None,
                   donate_input: bool = False,
                   materialize: bool = True) -> jax.Array:
    """Equivalent of PyTorch `x.view(x.size(0), -1)`; data pass done in Pallas."""
    B = x.shape[0]
    F = math.prod(x.shape[1:]) if x.ndim > 1 else 1

    if not materialize:
        # Flatten of a row-major contiguous array is metadata-only; this is the
        # true optimum (0 HBM bytes) when no materialized copy is required.
        return jnp.reshape(x, (B, F))

    if target_block_bytes is None:
        target_block_bytes = _default_block_bytes()

    total = B * F
    itemsize = jnp.dtype(x.dtype).itemsize
    total_bytes = total * itemsize
    sub = _sublane_multiple(x.dtype)

    if total % _LANE == 0:
        # --- Main path: re-tile the flat element stream as a (rows, W) slab. ---
        # Prefer a W whose row count is sublane-aligned (dense vregs, unmasked
        # vst); otherwise take the largest 128-multiple that divides exactly.
        W = None
        for cand in (4096, 2048, 1024, 512, 256, 128):
            if total % cand == 0 and (total // cand) % sub == 0:
                W = cand
                break
        if W is None:
            for cand in (4096, 2048, 1024, 512, 256, 128):
                if total % cand == 0:
                    W = cand
                    break
        rows = total // W

        if rows <= sub:
            rows_tile = rows  # full-array-dim exception to the (8, 128) rule
        else:
            max_rows = max(sub, (target_block_bytes // (W * itemsize)) // sub * sub)
            rows_tile = min(rows, max_rows)  # multiple of `sub` -> dense sublanes
            if pl.cdiv(rows, rows_tile) < 2:
                # Guarantee >= 2 row tiles so v7x's two TensorCores each stream
                # half the copy (neutral on single-TC v5e/v6e).
                half = max(sub, ((pl.cdiv(rows, 2) + sub - 1) // sub) * sub)
                rows_tile = min(rows_tile, half)

        grid = (pl.cdiv(rows, rows_tile),)
        x_slab = jnp.reshape(x, (rows, W))  # metadata-only (row-major)
        out = _pallas_copy(x_slab, (rows_tile, W), grid,
                           lambda i: (i, 0), total_bytes, donate_input)
        return jnp.reshape(out, (B, F))  # metadata-only

    # --- Ragged fallback: total element count not a multiple of 128. ---
    # 2-D grid over (B, F): batch axis is tiled too, so block bytes stay near
    # target_block_bytes regardless of B (no VMEM blow-up for huge batches).
    # TODO(synk): dense-prefix restructure (route floor(total/(sub*128)) elems
    # through the lane-dense main path, masked tail separately) would remove
    # the remaining masked lane/sublane stores here.
    x_flat = jnp.reshape(x, (B, F))

    if B <= sub:
        b_tile = B  # full-array-dim exception
    else:
        b_tile = max(sub, min(B, 512) // sub * sub)

    if F <= _LANE:
        lane_tile = F  # full-array-dim exception
    else:
        lane_cap = max(_LANE,
                       (target_block_bytes // (b_tile * itemsize)) // _LANE * _LANE)
        lane_tile = min(pl.cdiv(F, _LANE) * _LANE, lane_cap)

    grid = (pl.cdiv(B, b_tile), pl.cdiv(F, lane_tile))
    out = _pallas_copy(x_flat, (b_tile, lane_tile), grid,
                       lambda i, j: (i, j), total_bytes, donate_input)
    return out


if __name__ == "__main__":
    key = jax.random.PRNGKey(0)
    # Small NCHW input: B=2, C=4, H=W=16 (consistent with a conv feature map).
    x = jax.random.normal(key, (2, 4, 16, 16), dtype=jnp.float32)

    # Reference: torch x.view(x.size(0), -1) == row-major reshape.
    y_ref = jnp.reshape(x, (x.shape[0], -1))

    flatten_fn = jax.jit(flatten_pallas)
    y = jax.block_until_ready(flatten_fn(x))

    assert y.shape == (2, 4 * 16 * 16), y.shape
    assert y.dtype == x.dtype
    assert bool(jnp.array_equal(y, y_ref))

    print("KERNEL_OK")
</pallas_src>

<mosaic_0001>
module attributes {stable_mosaic.version = 11 : i64} {
  func.func @_copy_kernel(%arg0: i32, %arg1: memref<8x256xf32, #tpu.memory_space<vmem>>, %arg2: memref<8x256xf32, #tpu.memory_space<vmem>>) attributes {dimension_semantics = [#tpu.dimension_semantics<parallel>], iteration_bounds = array<i64: 1>, scalar_prefetch = 0 : i64, scratch_operands = 0 : i64, tpu.core_type = #tpu.core_type<tc>, window_params = [{transform_indices = @transform_0, window_bounds = array<i64: 8, 256>}, {transform_indices = @transform_1, window_bounds = array<i64: 8, 256>}]} {
    %c0 = arith.constant 0 : index
    %c0_0 = arith.constant 0 : index
    %0 = vector.load %arg1[%c0, %c0_0] : memref<8x256xf32, #tpu.memory_space<vmem>>, vector<8x256xf32>
    %c0_1 = arith.constant 0 : index
    %c0_2 = arith.constant 0 : index
    %1 = vector.load %arg2[%c0_1, %c0_2] : memref<8x256xf32, #tpu.memory_space<vmem>>, vector<8x256xf32>
    tpu.vector_store %arg2[%c0_1, %c0_2], %0 {strides = array<i32>} : memref<8x256xf32, #tpu.memory_space<vmem>>, vector<8x256xf32>,
    return
  }
  func.func @transform_0(%arg0: i32) -> (i32, i32) {
    %c0_i32 = arith.constant 0 : i32
    %c0_i32_0 = arith.constant 0 : i32
    return %arg0, %c0_i32 : i32, i32
  }
  func.func @transform_1(%arg0: i32) -> (i32, i32) {
    %c0_i32 = arith.constant 0 : i32
    %c0_i32_0 = arith.constant 0 : i32
    return %arg0, %c0_i32 : i32, i32
  }
}

</mosaic_0001>

<bundles_post_ra>
// kernel: flatten_pallas.1
= control target key start
LH: loop header
LB: loop body
LE: loop exit
PB: predicated region body
PF: predicated region fallthrough
CT: control target
= control target key end

     0   :  { %s38_s0 = inlined_call_operand.vmem [shape: f32[8,256], index: 0, kind: input, shape index: {}]   ;;  %s39_s1 = inlined_call_operand.vmem [shape: f32[8,256], index: 1, kind: output, shape index: {}]  }
   0x1   :  { %v8_v0 = vld [vmem:[%s38_s0] sm:$0xff]  ;;  %v9_v1 = vld [vmem:[%s38_s0 + $0x8] sm:$0xff] }
   0x2   :  { %10 = vst [vmem:[%s39_s1] sm:$0xff] %v8_v0 }
   0x3   :  { %11 = vst [vmem:[%s39_s1 + $0x8] sm:$0xff] %v9_v1 }

</bundles_post_ra>
